<compile_context>
chip_gen: v5e
topology: v5e:2x2
jax: 0.10.0
libtpu: 0.0.40
codegen_flags: <defaults>
</compile_context>

<pallas_src>
import functools
import math

import jax
import jax.numpy as jnp
from jax.experimental import pallas as pl
from jax.experimental.pallas import tpu as pltpu

_LANE = 128      # TPU lane width; fc1_dims (45) is zero-padded up to this
_SUBLANE = 8


def _round_up(x, m):
    return ((x + m - 1) // m) * m


def _cdiv(a, b):
    return -(-a // b)


def critic_kernel(x_ref, w_ref, b_ref, out_ref, *, d_in, d_in_pad, lane):
    """One batch tile of the 3-layer critic MLP.

    x_ref   : (TB, d_in)              streamed batch tile (f32 or bf16)
    w_ref   : (d_in_pad+lane+8, lane) bf16 packed weight slab (resident)
    b_ref   : (8, lane)               f32  packed bias slab (resident)
    out_ref : (1, TB)                 f32  lane-dense values
    """
    x = x_ref[...].astype(jnp.bfloat16)                        # (TB, d_in)

    w1 = w_ref[0:d_in, :]                                      # (d_in, 128) bf16
    w2 = w_ref[d_in_pad:d_in_pad + lane, :]                    # (128, 128)  bf16
    w3 = w_ref[d_in_pad + lane:d_in_pad + lane + 1, :]         # (1, 128)    bf16
    b1 = b_ref[0:1, :]                                         # (1, 128)    f32
    b2 = b_ref[1:2, :]                                         # (1, 128)    f32
    b3 = b_ref[2:3, 0:1]                                       # (1, 1)      f32

    # fc1 + ReLU (MXU, bf16 operands, f32 accumulate). Padded lanes stay 0.
    h1 = jnp.maximum(jnp.dot(x, w1, preferred_element_type=jnp.float32) + b1, 0.0)

    # fc2 + ReLU
    h2 = jnp.maximum(
        jnp.dot(h1.astype(jnp.bfloat16), w2, preferred_element_type=jnp.float32) + b2,
        0.0)

    # Value head (45 -> 1): VPU broadcast-multiply + lane reduction (padded lanes of
    # both h2 and w3 are zero), then a (TB,) -> (1, TB) relayout so the store and
    # writeback DMA stay lane-dense.
    # TODO(synk): if an xprof bundle dump shows this relayout saturating the XLU,
    # A/B against a natural (B, 1) output layout per the perf review.
    v = jnp.sum(h2 * w3.astype(jnp.float32), axis=-1)          # (TB,)
    out_ref[...] = (v[None, :] + b3).astype(out_ref.dtype)     # (1, TB) lane-dense


def pack_params(params, *, fc1_dims=45):
    """Pack the six parameter tensors into one bf16 weight slab + one f32 bias slab.

    Call ONCE at init time (hoisted out of the per-forward path): the slabs are the
    resident kernel inputs, so per-call we avoid ~6 small scatter/cast XLA ops that
    would otherwise serialize ahead of the kernel.
    """
    w1, b1, w2, b2, w3, b3 = params
    d_in = w1.shape[0]
    d_in_pad = _round_up(d_in, _SUBLANE)
    rows = d_in_pad + _LANE + _SUBLANE

    w_slab = jnp.zeros((rows, _LANE), jnp.float32)
    w_slab = w_slab.at[:d_in, :fc1_dims].set(w1.astype(jnp.float32))
    w_slab = w_slab.at[d_in_pad:d_in_pad + fc1_dims, :fc1_dims].set(w2.astype(jnp.float32))
    w_slab = w_slab.at[d_in_pad + _LANE, :fc1_dims].set(w3[:, 0].astype(jnp.float32))
    w_slab = w_slab.astype(jnp.bfloat16)

    b_slab = jnp.zeros((_SUBLANE, _LANE), jnp.float32)
    b_slab = b_slab.at[0, :fc1_dims].set(b1[0].astype(jnp.float32))
    b_slab = b_slab.at[1, :fc1_dims].set(b2[0].astype(jnp.float32))
    b_slab = b_slab.at[2, 0].set(b3[0, 0].astype(jnp.float32))
    return w_slab, b_slab


def _pick_block_rows(batch, d_in, requested=None):
    """Adaptive batch-tile rows."""
    lane_pad = _round_up(max(d_in, 1), _LANE)
    if requested is None:
        # ~4 MiB of lane-padded f32 VMEM per streamed x buffer: per-grid-step DMA
        # comfortably exceeds the ~0.35us step overhead, while double-buffered
        # tiles + f32 intermediates stay inside scoped VMEM on every generation
        # (v7x: 64 MiB physical / 32 MiB scoped default).
        target_bytes = 4 * 1024 * 1024
        tb = (target_bytes // (4 * lane_pad) // _LANE) * _LANE
        tb = max(_LANE, min(tb, 8192))
    else:
        tb = _round_up(requested, _LANE)
    # Never tile wider than the batch needs, and keep grid >= 2 when possible so
    # both v7x TensorCores get at least one tile under ("parallel",) semantics.
    tb = min(tb, max(_LANE, _round_up(_cdiv(batch, 2), _LANE)))
    return tb


def _vmem_limit_bytes(tb, d_in, w_rows):
    """Explicit scoped-VMEM budget: 2x-buffered x tiles + f32/bf16 intermediates
    + output buffers + resident params, with headroom, capped at 32 MiB (safe on
    v7x's 64 MiB-per-TC VMEM; above v5e's 16 MiB default so big tiles compile)."""
    lane_pad = _round_up(max(d_in, 1), _LANE)
    f32, bf16 = 4, 2
    est = 2 * tb * lane_pad * f32          # double-buffered streamed x (f32)
    est += tb * lane_pad * bf16            # bf16 copy of x
    est += 2 * tb * _LANE * f32            # h1, h2 (f32)
    est += tb * _LANE * bf16               # bf16 copy of h1
    est += tb * _LANE * f32                # h2*w3 product temp
    est += 2 * _SUBLANE * tb * f32         # (1, tb) output, sublane-padded, 2x buf
    est += 2 * (w_rows * _LANE * bf16 + _SUBLANE * _LANE * f32)   # param slabs
    return int(min(32 * 1024 * 1024, max(16 * 1024 * 1024, (est * 3) // 2)))


def _resident_spec(shape, resident_mode):
    if resident_mode is None:
        return pl.BlockSpec(shape, lambda i: (0, 0))
    return pl.BlockSpec(shape, lambda i: (0, 0), pipeline_mode=resident_mode)


def critic_forward(state, w_slab, b_slab, *, block_rows=None):
    """state: (B, input_dims) f32/bf16 -> value: (B, 1) f32.

    `w_slab`/`b_slab` come from `pack_params` (packed once at init).
    """
    B, d_in = state.shape
    d_in_pad = _round_up(d_in, _SUBLANE)
    assert w_slab.shape == (d_in_pad + _LANE + _SUBLANE, _LANE), "bad weight slab"
    assert b_slab.shape == (_SUBLANE, _LANE), "bad bias slab"

    tb = _pick_block_rows(B, d_in, block_rows)
    grid = _cdiv(B, tb)
    n_pad = grid * tb   # output sized to full blocks; cols >= B are discarded below

    kernel = functools.partial(critic_kernel, d_in=d_in, d_in_pad=d_in_pad, lane=_LANE)
    compiler_params = pltpu.CompilerParams(
        dimension_semantics=("parallel",),               # shard batch tiles across TCs
        vmem_limit_bytes=_vmem_limit_bytes(tb, d_in, w_slab.shape[0]),
    )

    def run(resident_mode):
        return pl.pallas_call(
            kernel,
            out_shape=jax.ShapeDtypeStruct((1, n_pad), jnp.float32),
            grid=(grid,),
            in_specs=[
                # Streamed batch tile; no wrapper-side pad — the last block may be a
                # partial boundary block whose extra rows are never observed.
                pl.BlockSpec((tb, d_in), lambda i: (i, 0)),
                _resident_spec(w_slab.shape, resident_mode),   # resident packed weights
                _resident_spec(b_slab.shape, resident_mode),   # resident packed biases
            ],
            # Lane-dense (1, tb) output blocks: contiguous writeback, 1/8th the DMA
            # bytes of the previous (8, tb) broadcast slab.
            out_specs=pl.BlockSpec((1, tb), lambda i: (0, i)),
            compiler_params=compiler_params,
        )(state, w_slab, b_slab)

    try:
        # Grid-invariant params: single VMEM buffer is enough.
        out = run(pl.Buffered(1))
    except Exception:  # pragma: no cover - fallback if pipeline_mode is unsupported
        out = run(None)

    # Columns >= B of `out` hold values computed from stale/garbage rows of the
    # partial input block; they are internal only and dropped here.
    return out[0, :B, None]                                   # (B, 1)


def init_params(key, input_dims, fc1_dims=45):
    """PyTorch nn.Linear-style init (U[-1/sqrt(fan_in), +1/sqrt(fan_in)]).
    Weights stored (in, out) so the kernel computes x @ W + b."""
    ks = jax.random.split(key, 6)

    def linear(kw, kb, fan_in, fan_out):
        bound = 1.0 / math.sqrt(fan_in)
        w = jax.random.uniform(kw, (fan_in, fan_out), jnp.float32, -bound, bound)
        b = jax.random.uniform(kb, (1, fan_out), jnp.float32, -bound, bound)
        return w, b

    w1, b1 = linear(ks[0], ks[1], input_dims, fc1_dims)
    w2, b2 = linear(ks[2], ks[3], fc1_dims, fc1_dims)
    w3, b3 = linear(ks[4], ks[5], fc1_dims, 1)
    return (w1, b1, w2, b2, w3, b3)


def _reference(state, params):
    """Pure-JAX reference of the same math (bf16 operands into the matmuls,
    f32 accumulation), matching the kernel's numerics."""
    w1, b1, w2, b2, w3, b3 = params
    hi = jax.lax.Precision.HIGHEST
    bf = lambda a: a.astype(jnp.bfloat16).astype(jnp.float32)
    h1 = jnp.maximum(jnp.dot(bf(state), bf(w1), precision=hi) + b1, 0.0)
    h2 = jnp.maximum(jnp.dot(bf(h1), bf(w2), precision=hi) + b2, 0.0)
    return jnp.dot(h2, bf(w3), precision=hi) + b3


# TODO(synk): the Adam optimizer step and checkpoint save/load of the PyTorch module
# are training/IO concerns, not part of the forward pass, and are not implemented.

if __name__ == "__main__":
    key = jax.random.PRNGKey(0)
    k_state, k_state2, k_params = jax.random.split(key, 3)

    input_dims = 32
    fc1_dims = 45
    params = init_params(k_params, input_dims, fc1_dims)
    # Pack parameters ONCE (hoisted out of the per-call path).
    w_slab, b_slab = pack_params(params, fc1_dims=fc1_dims)

    # Small case (single grid step, partial boundary block).
    batch = 8
    state = jax.random.normal(k_state, (batch, input_dims), jnp.float32)
    value = jax.block_until_ready(critic_forward(state, w_slab, b_slab))
    assert value.shape == (batch, 1)
    ref = _reference(state, params)
    assert jnp.allclose(value, ref, atol=1e-2, rtol=1e-2), "mismatch vs reference (small)"

    # Ragged batch exercising multiple grid steps (grid >= 2) + a partial last block,
    # with NO wrapper-side padding of the state array.
    batch2 = 300
    state2 = jax.random.normal(k_state2, (batch2, input_dims), jnp.float32)
    value2 = jax.block_until_ready(critic_forward(state2, w_slab, b_slab))
    assert value2.shape == (batch2, 1)
    ref2 = _reference(state2, params)
    assert jnp.allclose(value2, ref2, atol=1e-2, rtol=1e-2), "mismatch vs reference (tiled)"

    print("KERNEL_OK")
</pallas_src>

<mosaic_0001>
module attributes {stable_mosaic.version = 11 : i64} {
  func.func @critic_kernel(%arg0: i32, %arg1: memref<128x32xf32, #tpu.memory_space<vmem>>, %arg2: memref<168x128xbf16, #tpu.memory_space<vmem>>, %arg3: memref<8x128xf32, #tpu.memory_space<vmem>>, %arg4: memref<1x128xf32, #tpu.memory_space<vmem>>) attributes {dimension_semantics = [#tpu.dimension_semantics<parallel>], iteration_bounds = array<i64: 1>, scalar_prefetch = 0 : i64, scratch_operands = 0 : i64, tpu.core_type = #tpu.core_type<tc>, window_params = [{transform_indices = @transform_0, window_bounds = array<i64: 128, 32>}, {pipeline_mode = #tpu.pipeline_mode<synchronous>, transform_indices = @transform_1, window_bounds = array<i64: 168, 128>}, {pipeline_mode = #tpu.pipeline_mode<synchronous>, transform_indices = @transform_2, window_bounds = array<i64: 8, 128>}, {transform_indices = @transform_3, window_bounds = array<i64: 1, 128>}]} {
    %c0 = arith.constant 0 : index
    %c0_0 = arith.constant 0 : index
    %0 = vector.load %arg1[%c0, %c0_0] : memref<128x32xf32, #tpu.memory_space<vmem>>, vector<128x32xf32>
    %1 = arith.truncf %0 : vector<128x32xf32> to vector<128x32xbf16>
    %c0_1 = arith.constant 0 : index
    %c0_2 = arith.constant 0 : index
    %2 = vector.load %arg2[%c0_1, %c0_2] : memref<168x128xbf16, #tpu.memory_space<vmem>>, vector<32x128xbf16>
    %c32 = arith.constant 32 : index
    %c0_3 = arith.constant 0 : index
    %3 = vector.load %arg2[%c32, %c0_3] : memref<168x128xbf16, #tpu.memory_space<vmem>>, vector<128x128xbf16>
    %c160 = arith.constant 160 : index
    %c0_4 = arith.constant 0 : index
    %4 = vector.load %arg2[%c160, %c0_4] : memref<168x128xbf16, #tpu.memory_space<vmem>>, vector<1x128xbf16>
    %c0_5 = arith.constant 0 : index
    %c0_6 = arith.constant 0 : index
    %5 = vector.load %arg3[%c0_5, %c0_6] : memref<8x128xf32, #tpu.memory_space<vmem>>, vector<1x128xf32>
    %c1 = arith.constant 1 : index
    %c0_7 = arith.constant 0 : index
    %6 = vector.load %arg3[%c1, %c0_7] : memref<8x128xf32, #tpu.memory_space<vmem>>, vector<1x128xf32>
    %c2 = arith.constant 2 : index
    %c0_8 = arith.constant 0 : index
    %7 = vector.load %arg3[%c2, %c0_8] : memref<8x128xf32, #tpu.memory_space<vmem>>, vector<1x1xf32>
    %cst = arith.constant dense<0.000000e+00> : vector<128x128xf32>
    %8 = tpu.matmul %1, %2, %cst {dimension_numbers = #tpu.dot_dimension_numbers<[1], [0], [0], [1], [0, 0, 1, 1], [], []>} : vector<128x32xbf16>, vector<32x128xbf16>, vector<128x128xf32> -> vector<128x128xf32>
    %9 = vector.broadcast %5 : vector<1x128xf32> to vector<128x128xf32>
    %10 = arith.addf %8, %9 : vector<128x128xf32>
    %cst_9 = arith.constant 0.000000e+00 : f32
    %11 = vector.broadcast %cst_9 : f32 to vector<128x128xf32>
    %12 = arith.maximumf %10, %11 : vector<128x128xf32>
    %13 = arith.truncf %12 : vector<128x128xf32> to vector<128x128xbf16>
    %cst_10 = arith.constant dense<0.000000e+00> : vector<128x128xf32>
    %14 = tpu.matmul %13, %3, %cst_10 {dimension_numbers = #tpu.dot_dimension_numbers<[1], [0], [0], [1], [0, 0, 1, 1], [], []>} : vector<128x128xbf16>, vector<128x128xbf16>, vector<128x128xf32> -> vector<128x128xf32>
    %15 = vector.broadcast %6 : vector<1x128xf32> to vector<128x128xf32>
    %16 = arith.addf %14, %15 : vector<128x128xf32>
    %cst_11 = arith.constant 0.000000e+00 : f32
    %17 = vector.broadcast %cst_11 : f32 to vector<128x128xf32>
    %18 = arith.maximumf %16, %17 : vector<128x128xf32>
    %19 = arith.extf %4 : vector<1x128xbf16> to vector<1x128xf32>
    %20 = vector.broadcast %19 : vector<1x128xf32> to vector<128x128xf32>
    %21 = arith.mulf %18, %20 : vector<128x128xf32>
    %cst_12 = arith.constant dense<0.000000e+00> : vector<128xf32>
    %22 = vector.multi_reduction <add>, %21, %cst_12 [1] : vector<128x128xf32> to vector<128xf32>
    %23 = vector.shape_cast %22 : vector<128xf32> to vector<1x128xf32>
    %24 = vector.broadcast %7 : vector<1x1xf32> to vector<1x128xf32>
    %25 = arith.addf %23, %24 : vector<1x128xf32>
    %c0_13 = arith.constant 0 : index
    %c0_14 = arith.constant 0 : index
    %26 = vector.load %arg4[%c0_13, %c0_14] : memref<1x128xf32, #tpu.memory_space<vmem>>, vector<1x128xf32>
    tpu.vector_store %arg4[%c0_13, %c0_14], %25 {strides = array<i32>} : memref<1x128xf32, #tpu.memory_space<vmem>>, vector<1x128xf32>,
    return
  }
  func.func @transform_0(%arg0: i32) -> (i32, i32) {
    %c0_i32 = arith.constant 0 : i32
    %c0_i32_0 = arith.constant 0 : i32
    return %arg0, %c0_i32 : i32, i32
  }
  func.func @transform_1(%arg0: i32) -> (i32, i32) {
    %c0_i32 = arith.constant 0 : i32
    %c0_i32_0 = arith.constant 0 : i32
    %c0_i32_1 = arith.constant 0 : i32
    return %c0_i32, %c0_i32_0 : i32, i32
  }
  func.func @transform_2(%arg0: i32) -> (i32, i32) {
    %c0_i32 = arith.constant 0 : i32
    %c0_i32_0 = arith.constant 0 : i32
    %c0_i32_1 = arith.constant 0 : i32
    return %c0_i32, %c0_i32_0 : i32, i32
  }
  func.func @transform_3(%arg0: i32) -> (i32, i32) {
    %c0_i32 = arith.constant 0 : i32
    %c0_i32_0 = arith.constant 0 : i32
    return %c0_i32, %arg0 : i32, i32
  }
}

module attributes {stable_mosaic.version = 11 : i64} {
  func.func @critic_kernel(%arg0: i32, %arg1: memref<128x32xf32, #tpu.memory_space<vmem>>, %arg2: memref<168x128xbf16, #tpu.memory_space<vmem>>, %arg3: memref<8x128xf32, #tpu.memory_space<vmem>>, %arg4: memref<1x128xf32, #tpu.memory_space<vmem>>) attributes {dimension_semantics = [#tpu.dimension_semantics<parallel>], iteration_bounds = array<i64: 1>, scalar_prefetch = 0 : i64, scratch_operands = 0 : i64, tpu.core_type = #tpu.core_type<tc>, window_params = [{transform_indices = @transform_0, window_bounds = array<i64: 128, 32>}, {pipeline_mode = #tpu.pipeline_mode<synchronous>, transform_indices = @transform_1, window_bounds = array<i64: 168, 128>}, {pipeline_mode = #tpu.pipeline_mode<synchronous>, transform_indices = @transform_2, window_bounds = array<i64: 8, 128>}, {transform_indices = @transform_3, window_bounds = array<i64: 1, 128>}]} {
    %c0 = arith.constant 0 : index
    %c0_0 = arith.constant 0 : index
    %0 = vector.load %arg1[%c0, %c0_0] : memref<128x32xf32, #tpu.memory_space<vmem>>, vector<128x32xf32>
    %1 = arith.truncf %0 : vector<128x32xf32> to vector<128x32xbf16>
    %c0_1 = arith.constant 0 : index
    %c0_2 = arith.constant 0 : index
    %2 = vector.load %arg2[%c0_1, %c0_2] : memref<168x128xbf16, #tpu.memory_space<vmem>>, vector<32x128xbf16>
    %c32 = arith.constant 32 : index
    %c0_3 = arith.constant 0 : index
    %3 = vector.load %arg2[%c32, %c0_3] : memref<168x128xbf16, #tpu.memory_space<vmem>>, vector<128x128xbf16>
    %c160 = arith.constant 160 : index
    %c0_4 = arith.constant 0 : index
    %4 = vector.load %arg2[%c160, %c0_4] : memref<168x128xbf16, #tpu.memory_space<vmem>>, vector<1x128xbf16>
    %c0_5 = arith.constant 0 : index
    %c0_6 = arith.constant 0 : index
    %5 = vector.load %arg3[%c0_5, %c0_6] : memref<8x128xf32, #tpu.memory_space<vmem>>, vector<1x128xf32>
    %c1 = arith.constant 1 : index
    %c0_7 = arith.constant 0 : index
    %6 = vector.load %arg3[%c1, %c0_7] : memref<8x128xf32, #tpu.memory_space<vmem>>, vector<1x128xf32>
    %c2 = arith.constant 2 : index
    %c0_8 = arith.constant 0 : index
    %7 = vector.load %arg3[%c2, %c0_8] : memref<8x128xf32, #tpu.memory_space<vmem>>, vector<1x1xf32>
    %cst = arith.constant dense<0.000000e+00> : vector<128x128xf32>
    %8 = tpu.matmul %1, %2, %cst {dimension_numbers = #tpu.dot_dimension_numbers<[1], [0], [0], [1], [0, 0, 1, 1], [], []>} : vector<128x32xbf16>, vector<32x128xbf16>, vector<128x128xf32> -> vector<128x128xf32>
    %9 = vector.broadcast %5 : vector<1x128xf32> to vector<128x128xf32>
    %10 = arith.addf %8, %9 : vector<128x128xf32>
    %cst_9 = arith.constant 0.000000e+00 : f32
    %11 = vector.broadcast %cst_9 : f32 to vector<128x128xf32>
    %12 = arith.maximumf %10, %11 : vector<128x128xf32>
    %13 = arith.truncf %12 : vector<128x128xf32> to vector<128x128xbf16>
    %cst_10 = arith.constant dense<0.000000e+00> : vector<128x128xf32>
    %14 = tpu.matmul %13, %3, %cst_10 {dimension_numbers = #tpu.dot_dimension_numbers<[1], [0], [0], [1], [0, 0, 1, 1], [], []>} : vector<128x128xbf16>, vector<128x128xbf16>, vector<128x128xf32> -> vector<128x128xf32>
    %15 = vector.broadcast %6 : vector<1x128xf32> to vector<128x128xf32>
    %16 = arith.addf %14, %15 : vector<128x128xf32>
    %cst_11 = arith.constant 0.000000e+00 : f32
    %17 = vector.broadcast %cst_11 : f32 to vector<128x128xf32>
    %18 = arith.maximumf %16, %17 : vector<128x128xf32>
    %19 = arith.extf %4 : vector<1x128xbf16> to vector<1x128xf32>
    %20 = vector.broadcast %19 : vector<1x128xf32> to vector<128x128xf32>
    %21 = arith.mulf %18, %20 : vector<128x128xf32>
    %cst_12 = arith.constant dense<0.000000e+00> : vector<128xf32>
    %22 = vector.multi_reduction <add>, %21, %cst_12 [1] : vector<128x128xf32> to vector<128xf32>
    %23 = vector.shape_cast %22 : vector<128xf32> to vector<1x128xf32>
    %24 = vector.broadcast %7 : vector<1x1xf32> to vector<1x128xf32>
    %25 = arith.addf %23, %24 : vector<1x128xf32>
    %c0_13 = arith.constant 0 : index
    %c0_14 = arith.constant 0 : index
    %26 = vector.load %arg4[%c0_13, %c0_14] : memref<1x128xf32, #tpu.memory_space<vmem>>, vector<1x128xf32>
    tpu.vector_store %arg4[%c0_13, %c0_14], %25 {strides = array<i32>} : memref<1x128xf32, #tpu.memory_space<vmem>>, vector<1x128xf32>,
    return
  }
  func.func @transform_0(%arg0: i32) -> (i32, i32) {
    %c0_i32 = arith.constant 0 : i32
    %c0_i32_0 = arith.constant 0 : i32
    return %arg0, %c0_i32 : i32, i32
  }
  func.func @transform_1(%arg0: i32) -> (i32, i32) {
    %c0_i32 = arith.constant 0 : i32
    %c0_i32_0 = arith.constant 0 : i32
    %c0_i32_1 = arith.constant 0 : i32
    return %c0_i32, %c0_i32_0 : i32, i32
  }
  func.func @transform_2(%arg0: i32) -> (i32, i32) {
    %c0_i32 = arith.constant 0 : i32
    %c0_i32_0 = arith.constant 0 : i32
    %c0_i32_1 = arith.constant 0 : i32
    return %c0_i32, %c0_i32_0 : i32, i32
  }
  func.func @transform_3(%arg0: i32) -> (i32, i32) {
    %c0_i32 = arith.constant 0 : i32
    %c0_i32_0 = arith.constant 0 : i32
    return %c0_i32, %arg0 : i32, i32
  }
}

</mosaic_0001>

<bundles_post_ra>
// kernel: tpu_custom_call.1
= control target key start
LH: loop header
LB: loop body
LE: loop exit
PB: predicated region body
PF: predicated region fallthrough
CT: control target
= control target key end

     0   :  { %8 = vsyncpa [#allocation3], 0  ;;  %s840_s0 = inlined_call_operand.hbm [shape: f32[8,32], index: 0, kind: input, shape index: {}]   ;;  %s841_s1 = inlined_call_operand.hbm [shape: bf16[168,128], index: 1, kind: input, shape index: {}]   ;;  %s842_s2 = inlined_call_operand.hbm [shape: f32[8,128], index: 2, kind: input, shape index: {}]   ;;  %s843_s3 = inlined_call_operand.hbm [shape: f32[1,128], index: 3, kind: output, shape index: {}]  }
   0x1   :  { %9 = vsyncpa [#allocation6], 0 }
   0x2   :  { %10 = vsyncpa [#allocation4], 0  ;;  %s28_s14 = sshll.u32 %s841_s1, 4  ;;  %s29_s14 = int_to_ptr.hbm [resolvable:$true] %s28_s14 }
   0x3   :  { %14 = vsyncadd [#allocation3], 1920  ;;  %s737_s15 = smov [#allocation5]   ;;  %s15_s19 = sshll.u32 %s840_s0, 4  ;;  %s16_s19 = int_to_ptr.hbm [resolvable:$true] %s15_s19 }
   0x4   :  { %s30_s16 = sshll.u32 %s737_s15, 4  ;;  %s738_s20 = smov 64   ;;  %s31_s16 = int_to_ptr.vmem [resolvable:$true] %s30_s16 }
   0x5   :  { %s739_s21 = smov 4   ;;  %s740_s22 = smov [#allocation2]  }
   0x6   :  { %36 = dma.hbm_to_vmem [thread:$0]  %s29_s14, 1344, %s31_s16, [#allocation6], %s738_s20, %s738_s20, %s739_s21  }
   0x7   :  { %s17_s23 = sshll.u32 %s740_s22, 4  ;;  %s741_s24 = smov 128   ;;  %s18_s23 = int_to_ptr.vmem [resolvable:$true] %s17_s23 }
   0x8   :  { %s742_s25 = smov 8   ;;  %s42_s27 = sshll.u32 %s842_s2, 4  ;;  %s43_s27 = int_to_ptr.hbm [resolvable:$true] %s42_s27 }
   0x9   :  { %23 = dma.hbm_to_vmem [thread:$0]  %s16_s19, 128, %s18_s23, [#allocation3], %s741_s24, %s741_s24, %s742_s25  }
   0xa   :  { %s743_s28 = smov [#allocation7]  }
   0xb   :  { %s44_s29 = sshll.u32 %s743_s28, 4  ;;  %s45_s29 = int_to_ptr.vmem [resolvable:$true] %s44_s29 }
   0xc   :  { %47 = dma.hbm_to_vmem [thread:$0]  %s43_s27, 128, %s45_s29, [#allocation6]  }
   0xd   :  { %731 = dma.done.wait [#allocation3], 2048  }
   0xe   :  { %732 = vsyncadd [#allocation3], 4294965248 }
   0xf   :  { %733 = dma.done.wait [#allocation6], 1472  }
  0x10   :  { %734 = vsyncadd [#allocation6], 4294965824  ;;  %v602_v0 = vld [vmem:[#allocation5 + $0x8] sm:$0xff]  ;;  %v601_v1 = vld [vmem:[#allocation5] sm:$0xff]  ;;  %vm122_vm0 = vcmask 261120   ;;  %vm475_vm1 = vcmask 130112  }
  0x11   :  { %153 = vmatpush.bf16.msra.mxu0 %v602_v0  ;;  %v61_v2 = vld [vmem:[#allocation2] sm:$0xff]  ;;  %v62_v3 = vld [vmem:[#allocation2 + $0x8] sm:$0xff]  ;;  %611 = vmatpush.bf16.msra.mxu3 %v602_v0  ;;  %v63_v5 = vld [vmem:[#allocation2 + $0x10] sm:$0xff]  ;;  %vm479_vm2 = vcmask 195712   ;;  %vm483_vm3 = vcmask 261312   ;;  %vm487_vm4 = vcmask 326912  }
  0x12   :  { %v77_v4 = vpack.c.bf16 %v62_v3, %v61_v2  ;;  %v64_v6 = vld [vmem:[#allocation2 + $0x18] sm:$0xff]  ;;  %v65_v8 = vld [vmem:[#allocation2 + $0x20] sm:$0xff]  ;;  %v66_v9 = vld [vmem:[#allocation2 + $0x28] sm:$0xff]  ;;  %vm491_vm5 = vcmask 392512   ;;  %vm495_vm6 = vcmask 458112   ;;  %vm499_vm7 = vcmask 523712  }
  0x13   :  { %v78_v7 = vpack.c.bf16 %v64_v6, %v63_v5  ;;  %v79_v10 = vpack.c.bf16 %v66_v9, %v65_v8  ;;  %v71_v11 = vld [vmem:[#allocation2 + $0x50] sm:$0xff]  ;;  %v72_v12 = vld [vmem:[#allocation2 + $0x58] sm:$0xff]  ;;  %v610_v14 = vld [vmem:[#allocation5 + $0x48] sm:$0xff]  ;;  %v744_v9 = vmov 0   ;;  %vm503_vm8 = vcmask 589312   ;;  %s745_s0 = smov [#allocation8]  }
  0x14   :  { %v82_v13 = vpack.c.bf16 %v72_v12, %v71_v11  ;;  %269 = vmatpush.bf16.msra.mxu1 %v610_v14  ;;  %v609_v15 = vld [vmem:[#allocation5 + $0x40] sm:$0xff]  ;;  %613 = vmatpush.bf16.msra.mxu2 %v610_v14  ;;  %v608_v16 = vld [vmem:[#allocation5 + $0x38] sm:$0xff]  ;;  %v67_v17 = vld [vmem:[#allocation2 + $0x30] sm:$0xff]  ;;  %vm507_vm9 = vcmask 654912   ;;  %vm511_vm10 = vcmask 720512   ;;  %vm515_vm11 = vcmask 786112  }
  0x15   :  { %154 = vmatpush.bf16.msra.mxu0 %v601_v1  ;;  %612 = vmatpush.bf16.msra.mxu3 %v601_v1  ;;  %v68_v18 = vld [vmem:[#allocation2 + $0x38] sm:$0xff]  ;;  %v73_v19 = vld [vmem:[#allocation2 + $0x60] sm:$0xff]  ;;  %v74_v20 = vld [vmem:[#allocation2 + $0x68] sm:$0xff]  ;;  %vm519_vm12 = vcmask 851712   ;;  %vm523_vm13 = vcmask 917312   ;;  %vm527_vm14 = vcmask 982912  }
  0x16   :  { %v80_v21 = vpack.c.bf16 %v68_v18, %v67_v17  ;;  %v607_v22 = vld [vmem:[#allocation5 + $0x30] sm:$0xff]  ;;  %v83_v23 = vpack.c.bf16 %v74_v20, %v73_v19  ;;  %v69_v24 = vld [vmem:[#allocation2 + $0x40] sm:$0xff]  ;;  %v70_v25 = vld [vmem:[#allocation2 + $0x48] sm:$0xff]  ;;  %630 = vset.pattern.permute.xlu1 %v744_v9  ;;  %631 = vset.pattern.permute.xlu2 %v744_v9  ;;  %s540_s2 = sshll.u32 %s745_s0, 4  ;;  %s542_s5 = sshll.u32 %s843_s3, 4  ;;  %vm531_vm15 = vcmask 1048512   ;;  %s541_s2 = int_to_ptr.vmem [resolvable:$true] %s540_s2  ;;  %s543_s5 = int_to_ptr.hbm [resolvable:$true] %s542_s5 }
  0x17   :  { %v75_v26 = vld [vmem:[#allocation2 + $0x70] sm:$0xff]  ;;  %v76_v27 = vld [vmem:[#allocation2 + $0x78] sm:$0xff]  ;;  %v81_v28 = vpack.c.bf16 %v70_v25, %v69_v24  ;;  %v606_v30 = vld [vmem:[#allocation5 + $0x28] sm:$0xff]  ;;  %632 = vset.pattern.permute.xlu0 %v744_v9 }
  0x18   :  { %561 = vmatmul.msk.bf16.vlgmr.msra.gmra.mxu0 %vm122_vm0, %v77_v4  ;;  %566 = vmatmul.msk.bf16.vlgmr.msra.gmra.mxu3 %vm122_vm0, %v82_v13  ;;  %v84_v29 = vpack.c.bf16 %v76_v27, %v75_v26  ;;  %v605_v31 = vld [vmem:[#allocation5 + $0x20] sm:$0xff]  ;;  %v604_v32 = vld [vmem:[#allocation5 + $0x18] sm:$0xff]  ;;  %v603_v33 = vld [vmem:[#allocation5 + $0x10] sm:$0xff] }
  0x19   :  { %270 = vmatpush.bf16.msra.mxu1 %v609_v15  ;;  %614 = vmatpush.bf16.msra.mxu2 %v609_v15  ;;  %v783_v35 = vld [vmem:[#allocation7] ss:$0 sm:$0xff]  ;;  %v108_v8 = vld [vmem:[#allocation7 + $0x2] sm:$0x1] }
  0x1a   :  { %386 = vperm.xlu1 %630, %v108_v8  }
  0x1d   :  { %271 = vmatpush.bf16.msra.mxu1 %v608_v16  ;;  %615 = vmatpush.bf16.msra.mxu2 %v608_v16 }
  0x21   :  { %272 = vmatpush.bf16.msra.mxu1 %v607_v22  ;;  %616 = vmatpush.bf16.msra.mxu2 %v607_v22 }
  0x25   :  { %273 = vmatpush.bf16.msra.mxu1 %v606_v30  ;;  %617 = vmatpush.bf16.msra.mxu2 %v606_v30  ;;  %v801_v30 = vld [vmem:[#allocation7 + $0x1] ss:$0 sm:$0xff] }
  0x28   :  { %562 = vmatmul.msk.bf16.gmra.mxu0 %vm122_vm0, %v78_v7  ;;  %567 = vmatmul.msk.bf16.gmra.mxu3 %vm122_vm0, %v83_v23 }
  0x29   :  { %274 = vmatpush.bf16.msra.mxu1 %v605_v31  ;;  %618 = vmatpush.bf16.msra.mxu2 %v605_v31 }
  0x2d   :  { %275 = vmatpush.bf16.msra.mxu1 %v604_v32  ;;  %619 = vmatpush.bf16.msra.mxu2 %v604_v32 }
  0x31   :  { %276 = vmatpush.bf16.msra.mxu1 %v603_v33  ;;  %620 = vmatpush.bf16.msra.mxu2 %v603_v33 }
  0x38   :  { %563 = vmatmul.msk.bf16.gmra.mxu0 %vm122_vm0, %v79_v10  ;;  %568 = vmatmul.msk.bf16.gmra.mxu3 %vm122_vm0, %v84_v29  ;;  %v105_v29 = vld [vmem:[#allocation5 + $0x50] sm:$0x1] }
  0x39   :  { %v334_v31 = vunpack.c.l.bf16 %v105_v29 }
  0x48   :  { %564 = vmatmul.msk.bf16.gmra.mxu0 %vm122_vm0, %v80_v21 }
  0x58   :  { %565 = vmatmul.msk.bf16.gmra.mxu0 %vm122_vm0, %v81_v28 }
  0x95   :  { %v156_v34 = vpop.f32.mrf.mxu0 }
  0x96   :  { %v157_v36 = vadd.f32 %v783_v35, %v156_v34  ;;  %v804_v34 = vperm.slane %v334_v31, 0 }
  0x98   :  { %v196_v39 = vmax.f32 %v157_v36, 0.0 }
  0x9b   :  { %v181_v0 = vpop.f32.mrf.mxu3 }
  0x9c   :  { %v182_v11 = vadd.f32 %v783_v35, %v181_v0 }
  0x9d   :  { %v158_v37 = vpop.f32.mrf.mxu0 }
  0x9e   :  { %v159_v38 = vadd.f32 %v783_v35, %v158_v37  ;;  %v206_v13 = vmax.f32 %v182_v11, 0.0 }
  0xa0   :  { %v197_v40 = vmax.f32 %v159_v38, 0.0 }
  0xa2   :  { %v212_v41 = vpack.c.bf16 %v197_v40, %v196_v39 }
  0xa3   :  { %v183_v4 = vpop.f32.mrf.mxu3 }
  0xa4   :  { %277 = vmatmul.bf16.vlgmr.msra.gmra.mxu1 %v212_v41  ;;  %v184_v12 = vadd.f32 %v783_v35, %v183_v4 }
  0xa5   :  { %v161_v42 = vpop.f32.mrf.mxu0 }
  0xa6   :  { %v162_v43 = vadd.f32 %v783_v35, %v161_v42  ;;  %v207_v14 = vmax.f32 %v184_v12, 0.0 }
  0xa8   :  { %v198_v46 = vmax.f32 %v162_v43, 0.0  ;;  %v217_v15 = vpack.c.bf16 %v207_v14, %v206_v13 }
  0xab   :  { %v186_v10 = vpop.f32.mrf.mxu3 }
  0xac   :  { %v187_v17 = vadd.f32 %v783_v35, %v186_v10 }
  0xad   :  { %v163_v44 = vpop.f32.mrf.mxu0 }
  0xae   :  { %v164_v45 = vadd.f32 %v783_v35, %v163_v44  ;;  %v208_v20 = vmax.f32 %v187_v17, 0.0 }
  0xb0   :  { %v199_v47 = vmax.f32 %v164_v45, 0.0 }
  0xb2   :  { %v213_v48 = vpack.c.bf16 %v199_v47, %v198_v46 }
  0xb3   :  { %v188_v16 = vpop.f32.mrf.mxu3 }
  0xb4   :  { %282 = vmatmul.bf16.gmra.mxu1 %v213_v48  ;;  %v189_v18 = vadd.f32 %v783_v35, %v188_v16 }
  0xb5   :  { %v166_v49 = vpop.f32.mrf.mxu0 }
  0xb6   :  { %v167_v50 = vadd.f32 %v783_v35, %v166_v49  ;;  %v209_v21 = vmax.f32 %v189_v18, 0.0 }
  0xb8   :  { %v200_v53 = vmax.f32 %v167_v50, 0.0  ;;  %v218_v22 = vpack.c.bf16 %v209_v21, %v208_v20 }
  0xbb   :  { %v191_v19 = vpop.f32.mrf.mxu3 }
  0xbc   :  { %v192_v24 = vadd.f32 %v783_v35, %v191_v19 }
  0xbd   :  { %v168_v51 = vpop.f32.mrf.mxu0 }
  0xbe   :  { %v169_v52 = vadd.f32 %v783_v35, %v168_v51  ;;  %v210_v26 = vmax.f32 %v192_v24, 0.0 }
  0xc0   :  { %v201_v54 = vmax.f32 %v169_v52, 0.0 }
  0xc2   :  { %v214_v55 = vpack.c.bf16 %v201_v54, %v200_v53 }
  0xc3   :  { %v193_v23 = vpop.f32.mrf.mxu3 }
  0xc4   :  { %287 = vmatmul.bf16.gmra.mxu1 %v214_v55  ;;  %v194_v25 = vadd.f32 %v783_v35, %v193_v23 }
  0xc5   :  { %v171_v56 = vpop.f32.mrf.mxu0 }
  0xc6   :  { %v172_v57 = vadd.f32 %v783_v35, %v171_v56  ;;  %v211_v27 = vmax.f32 %v194_v25, 0.0 }
  0xc8   :  { %v202_v60 = vmax.f32 %v172_v57, 0.0  ;;  %v219_v28 = vpack.c.bf16 %v211_v27, %v210_v26 }
  0xcd   :  { %v173_v58 = vpop.f32.mrf.mxu0 }
  0xce   :  { %v174_v59 = vadd.f32 %v783_v35, %v173_v58 }
  0xd0   :  { %v203_v61 = vmax.f32 %v174_v59, 0.0 }
  0xd2   :  { %v215_v62 = vpack.c.bf16 %v203_v61, %v202_v60 }
  0xd4   :  { %292 = vmatmul.bf16.gmra.mxu1 %v215_v62 }
  0xd5   :  { %v176_v63 = vpop.f32.mrf.mxu0 }
  0xd6   :  { %v177_v1 = vadd.f32 %v783_v35, %v176_v63 }
  0xd8   :  { %v204_v5 = vmax.f32 %v177_v1, 0.0 }
  0xdd   :  { %v178_v2 = vpop.f32.mrf.mxu0 }
  0xde   :  { %v179_v3 = vadd.f32 %v783_v35, %v178_v2 }
  0xe0   :  { %v205_v6 = vmax.f32 %v179_v3, 0.0 }
  0xe2   :  { %v216_v7 = vpack.c.bf16 %v205_v6, %v204_v5 }
  0xe4   :  { %297 = vmatmul.bf16.vlgmr.msra.gmra.mxu2 %v216_v7 }
  0xf4   :  { %302 = vmatmul.bf16.gmra.mxu2 %v217_v15 }
 0x104   :  { %307 = vmatmul.bf16.gmra.mxu2 %v218_v22 }
 0x114   :  { %312 = vmatmul.bf16.gmra.mxu2 %v219_v28 }
 0x121   :  { %v278_v32 = vpop.f32.mrf.mxu1 }
 0x122   :  { %v279_v33 = vadd.f32 %v801_v30, %v278_v32 }
 0x124   :  { %v318_v36 = vmax.f32 %v279_v33, 0.0  ;;  %v387_v33 = vpop.permute.xlu1 %386 }
 0x126   :  { %v336_v37 = vmul.f32 %v804_v34, %v318_v36 }
 0x128   :  { %352 = vadd.xlane.f32.xlu0 %v336_v37 }
 0x129   :  { %v280_v38 = vpop.f32.mrf.mxu1 }
 0x12a   :  { %v281_v35 = vadd.f32 %v801_v30, %v280_v38 }
 0x12c   :  { %v319_v39 = vmax.f32 %v281_v35, 0.0  ;;  %v388_v35 = vperm.slane %v387_v33, 0 }
 0x12e   :  { %v337_v40 = vmul.f32 %v804_v34, %v319_v39 }
 0x130   :  { %354 = vadd.xlane.f32.xlu0 %v337_v40 }
 0x131   :  { %v283_v41 = vpop.f32.mrf.mxu1 }
 0x132   :  { %v284_v42 = vadd.f32 %v801_v30, %v283_v41 }
 0x134   :  { %v320_v43 = vmax.f32 %v284_v42, 0.0 }
 0x136   :  { %v338_v44 = vmul.f32 %v804_v34, %v320_v43 }
 0x138   :  { %356 = vadd.xlane.f32.xlu1 %v338_v44 }
 0x139   :  { %v285_v45 = vpop.f32.mrf.mxu1 }
 0x13a   :  { %v286_v46 = vadd.f32 %v801_v30, %v285_v45 }
 0x13c   :  { %v321_v47 = vmax.f32 %v286_v46, 0.0 }
 0x13e   :  { %v339_v48 = vmul.f32 %v804_v34, %v321_v47 }
 0x140   :  { %358 = vadd.xlane.f32.xlu1 %v339_v48 }
 0x141   :  { %v288_v49 = vpop.f32.mrf.mxu1 }
 0x142   :  { %v289_v50 = vadd.f32 %v801_v30, %v288_v49 }
 0x144   :  { %v322_v51 = vmax.f32 %v289_v50, 0.0 }
 0x146   :  { %v340_v52 = vmul.f32 %v804_v34, %v322_v51 }
 0x148   :  { %360 = vadd.xlane.f32.xlu2 %v340_v52 }
 0x149   :  { %v290_v53 = vpop.f32.mrf.mxu1 }
 0x14a   :  { %v291_v54 = vadd.f32 %v801_v30, %v290_v53 }
 0x14c   :  { %v323_v55 = vmax.f32 %v291_v54, 0.0 }
 0x14e   :  { %v341_v56 = vmul.f32 %v804_v34, %v323_v55 }
 0x150   :  { %362 = vadd.xlane.f32.xlu2 %v341_v56 }
 0x151   :  { %v293_v57 = vpop.f32.mrf.mxu1 }
 0x152   :  { %v294_v58 = vadd.f32 %v801_v30, %v293_v57 }
 0x154   :  { %v324_v59 = vmax.f32 %v294_v58, 0.0 }
 0x156   :  { %v342_v60 = vmul.f32 %v804_v34, %v324_v59 }
 0x158   :  { %364 = vadd.xlane.f32.xlu0 %v342_v60 }
 0x159   :  { %v295_v61 = vpop.f32.mrf.mxu1 }
 0x15a   :  { %v296_v62 = vadd.f32 %v801_v30, %v295_v61 }
 0x15c   :  { %v325_v63 = vmax.f32 %v296_v62, 0.0 }
 0x15e   :  { %v343_v0 = vmul.f32 %v804_v34, %v325_v63 }
 0x160   :  { %366 = vadd.xlane.f32.xlu1 %v343_v0 }
 0x167   :  { %v298_v1 = vpop.f32.mrf.mxu2 }
 0x168   :  { %v299_v2 = vadd.f32 %v801_v30, %v298_v1 }
 0x16a   :  { %v326_v3 = vmax.f32 %v299_v2, 0.0 }
 0x16c   :  { %v344_v4 = vmul.f32 %v804_v34, %v326_v3 }
 0x16e   :  { %368 = vadd.xlane.f32.xlu2 %v344_v4 }
 0x16f   :  { %v300_v5 = vpop.f32.mrf.mxu2 }
 0x170   :  { %v301_v6 = vadd.f32 %v801_v30, %v300_v5 }
 0x172   :  { %v327_v7 = vmax.f32 %v301_v6, 0.0  ;;  %v470_v6 = vlaneseq }
 0x174   :  { %v345_v8 = vmul.f32 %v804_v34, %v327_v7 }
 0x176   :  { %370 = vadd.xlane.f32.xlu0 %v345_v8  ;;  %v471_v8 = vand.u32 127, %v470_v6 }
 0x177   :  { %v303_v9 = vpop.f32.mrf.mxu2 }
 0x178   :  { %v304_v10 = vadd.f32 %v801_v30, %v303_v9  ;;  %v473_v9 = vadd.s32 4294967288, %v471_v8 }
 0x17a   :  { %v328_v11 = vmax.f32 %v304_v10, 0.0 }
 0x17c   :  { %v346_v12 = vmul.f32 %v804_v34, %v328_v11 }
 0x17e   :  { %372 = vadd.xlane.f32.xlu1 %v346_v12 }
 0x17f   :  { %v305_v13 = vpop.f32.mrf.mxu2 }
 0x180   :  { %v306_v14 = vadd.f32 %v801_v30, %v305_v13  ;;  %v477_v13 = vadd.s32 4294967280, %v471_v8 }
 0x182   :  { %v329_v15 = vmax.f32 %v306_v14, 0.0 }
 0x184   :  { %v347_v16 = vmul.f32 %v804_v34, %v329_v15 }
 0x186   :  { %374 = vadd.xlane.f32.xlu2 %v347_v16  ;;  %v481_v16 = vadd.s32 4294967272, %v471_v8 }
 0x187   :  { %v308_v17 = vpop.f32.mrf.mxu2 }
 0x188   :  { %v309_v18 = vadd.f32 %v801_v30, %v308_v17 }
 0x18a   :  { %v330_v19 = vmax.f32 %v309_v18, 0.0 }
 0x18c   :  { %v348_v20 = vmul.f32 %v804_v34, %v330_v19 }
 0x18e   :  { %376 = vadd.xlane.f32.xlu0 %v348_v20  ;;  %v489_v20 = vadd.s32 4294967256, %v471_v8 }
 0x18f   :  { %v310_v21 = vpop.f32.mrf.mxu2 }
 0x190   :  { %v311_v22 = vadd.f32 %v801_v30, %v310_v21  ;;  %v485_v21 = vadd.s32 4294967264, %v471_v8 }
 0x192   :  { %v331_v23 = vmax.f32 %v311_v22, 0.0 }
 0x194   :  { %v349_v24 = vmul.f32 %v804_v34, %v331_v23 }
 0x196   :  { %378 = vadd.xlane.f32.xlu1 %v349_v24 }
 0x197   :  { %v313_v25 = vpop.f32.mrf.mxu2 }
 0x198   :  { %v314_v26 = vadd.f32 %v801_v30, %v313_v25 }
 0x19a   :  { %v332_v27 = vmax.f32 %v314_v26, 0.0 }
 0x19b   :  { %v353_v37 = vpop.xlane.xlu0 %352 }
 0x19c   :  { %v350_v28 = vmul.f32 %v804_v34, %v332_v27  ;;  %v390_v40 = vadd.f32 %v388_v35, %v353_v37 }
 0x19e   :  { %380 = vadd.xlane.f32.xlu2 %v350_v28  ;;  %v497_v28 = vadd.s32 4294967240, %v471_v8 }
 0x19f   :  { %v315_v29 = vpop.f32.mrf.mxu2 }
 0x1a0   :  { %v316_v31 = vadd.f32 %v801_v30, %v315_v29 }
 0x1a2   :  { %v333_v32 = vmax.f32 %v316_v31, 0.0  ;;  %v493_v31 = vadd.s32 4294967248, %v471_v8 }
 0x1a3   :  { %v355_v42 = vpop.xlane.xlu0 %354 }
 0x1a4   :  { %v351_v36 = vmul.f32 %v804_v34, %v333_v32  ;;  %v391_v43 = vadd.f32 %v388_v35, %v355_v42  ;;  %v501_v32 = vadd.s32 4294967232, %v471_v8  ;;  %v513_v42 = vadd.s32 4294967208, %v471_v8 }
 0x1a6   :  { %382 = vadd.xlane.f32.xlu0 %v351_v36 }
 0x1ab   :  { %v357_v38 = vpop.xlane.xlu1 %356 }
 0x1ac   :  { %v392_v45 = vadd.f32 %v388_v35, %v357_v38 }
 0x1b3   :  { %v359_v39 = vpop.xlane.xlu1 %358 }
 0x1b4   :  { %v393_v41 = vadd.f32 %v388_v35, %v359_v39 }
 0x1b6   :  { %432 = vperm.xlu1 %630, %v393_v41   ;;  %423 = vperm.xlu2 %631, %v390_v40   ;;  %v509_v40 = vadd.s32 4294967216, %v471_v8  ;;  %v505_v41 = vadd.s32 4294967224, %v471_v8 }
 0x1ba   :  { %426 = vperm.xlu0 %632, %v391_v43  }
 0x1bb   :  { %v361_v44 = vpop.xlane.xlu2 %360 }
 0x1bc   :  { %v394_v46 = vadd.f32 %v388_v35, %v361_v44 }
 0x1be   :  { %429 = vperm.xlu2 %631, %v392_v45  }
 0x1c3   :  { %v363_v30 = vpop.xlane.xlu2 %362 }
 0x1c4   :  { %v395_v47 = vadd.f32 %v388_v35, %v363_v30 }
 0x1c6   :  { %438 = vperm.xlu1 %630, %v395_v47   ;;  %435 = vperm.xlu2 %631, %v394_v46  }
 0x1cb   :  { %v365_v34 = vpop.xlane.xlu0 %364 }
 0x1cc   :  { %v396_v48 = vadd.f32 %v388_v35, %v365_v34 }
 0x1ce   :  { %441 = vperm.xlu2 %631, %v396_v48  }
 0x1d3   :  { %v367_v49 = vpop.xlane.xlu1 %366 }
 0x1d4   :  { %v397_v50 = vadd.f32 %v388_v35, %v367_v49  ;;  %v521_v49 = vadd.s32 4294967192, %v471_v8 }
 0x1d6   :  { %444 = vperm.xlu1 %630, %v397_v50   ;;  %v517_v50 = vadd.s32 4294967200, %v471_v8 }
 0x1e1   :  { %v369_v51 = vpop.xlane.xlu2 %368 }
 0x1e2   :  { %v398_v52 = vadd.f32 %v388_v35, %v369_v51 }
 0x1e4   :  { %447 = vperm.xlu0 %632, %v398_v52  }
 0x1e9   :  { %v371_v53 = vpop.xlane.xlu0 %370 }
 0x1ea   :  { %v399_v54 = vadd.f32 %v388_v35, %v371_v53 }
 0x1ec   :  { %450 = vperm.xlu2 %631, %v399_v54   ;;  %v525_v54 = vadd.s32 4294967184, %v471_v8 }
 0x1f1   :  { %v373_v55 = vpop.xlane.xlu1 %372 }
 0x1f2   :  { %v400_v56 = vadd.f32 %v388_v35, %v373_v55 }
 0x1f4   :  { %453 = vperm.xlu1 %630, %v400_v56   ;;  %v529_v56 = vadd.s32 4294967176, %v471_v8 }
 0x1f9   :  { %v375_v57 = vpop.xlane.xlu2 %374 }
 0x1fa   :  { %v401_v58 = vadd.f32 %v388_v35, %v375_v57 }
 0x1fc   :  { %456 = vperm.xlu0 %632, %v401_v58  }
 0x201   :  { %v377_v59 = vpop.xlane.xlu0 %376 }
 0x202   :  { %v402_v60 = vadd.f32 %v388_v35, %v377_v59 }
 0x204   :  { %459 = vperm.xlu2 %631, %v402_v60  }
 0x209   :  { %v379_v61 = vpop.xlane.xlu1 %378 }
 0x20a   :  { %v403_v62 = vadd.f32 %v388_v35, %v379_v61 }
 0x20c   :  { %462 = vperm.xlu1 %630, %v403_v62  }
 0x211   :  { %v381_v63 = vpop.xlane.xlu2 %380 }
 0x212   :  { %v404_v0 = vadd.f32 %v388_v35, %v381_v63 }
 0x214   :  { %465 = vperm.xlu0 %632, %v404_v0  }
 0x219   :  { %v383_v1 = vpop.xlane.xlu0 %382  ;;  %v424_v3 = vpop.permute.xlu2 %423 }
 0x21a   :  { %v405_v2 = vadd.f32 %v388_v35, %v383_v1  ;;  %v472_v15 = vperm.slane %v424_v3, %v471_v8 }
 0x21c   :  { %468 = vperm.xlu2 %631, %v405_v2  }
 0x221   :  { %v430_v4 = vpop.permute.xlu2 %429 }
 0x222   :  { %v478_v18 = vperm.slane %v430_v4, %v477_v13 }
 0x228   :  { %v433_v5 = vpop.permute.xlu1 %432 }
 0x229   :  { %v436_v7 = vpop.permute.xlu2 %435  ;;  %v482_v23 = vperm.slane %v433_v5, %v481_v16 }
 0x22a   :  { %v486_v29 = vperm.slane %v436_v7, %v485_v21 }
 0x22c   :  { %v427_v10 = vpop.permute.xlu0 %426 }
 0x22d   :  { %v474_v12 = vperm.slane %v427_v10, %v473_v9 }
 0x22f   :  { %v476_v17 = vsel %vm475_vm1, %v474_v12, %v472_v15 }
 0x230   :  { %v480_v22 = vsel %vm479_vm2, %v478_v18, %v476_v17 }
 0x231   :  { %v442_v14 = vpop.permute.xlu2 %441  ;;  %v484_v26 = vsel %vm483_vm3, %v482_v23, %v480_v22 }
 0x232   :  { %v488_v33 = vsel %vm487_vm4, %v486_v29, %v484_v26  ;;  %v494_v35 = vperm.slane %v442_v14, %v493_v31 }
 0x238   :  { %v439_v11 = vpop.permute.xlu1 %438 }
 0x239   :  { %v490_v27 = vperm.slane %v439_v11, %v489_v20 }
 0x23b   :  { %v492_v37 = vsel %vm491_vm5, %v490_v27, %v488_v33 }
 0x23c   :  { %v496_v43 = vsel %vm495_vm6, %v494_v35, %v492_v37 }
 0x246   :  { %v451_v24 = vpop.permute.xlu2 %450 }
 0x247   :  { %v506_v34 = vperm.slane %v451_v24, %v505_v41 }
 0x248   :  { %v445_v19 = vpop.permute.xlu1 %444 }
 0x249   :  { %v498_v38 = vperm.slane %v445_v19, %v497_v28 }
 0x24b   :  { %v500_v30 = vsel %vm499_vm7, %v498_v38, %v496_v43 }
 0x256   :  { %v448_v25 = vpop.permute.xlu0 %447 }
 0x257   :  { %v502_v39 = vperm.slane %v448_v25, %v501_v32 }
 0x259   :  { %v504_v46 = vsel %vm503_vm8, %v502_v39, %v500_v30 }
 0x25a   :  { %v508_v52 = vsel %vm507_vm9, %v506_v34, %v504_v46 }
 0x25e   :  { %v460_v44 = vpop.permute.xlu2 %459 }
 0x25f   :  { %v518_v58 = vperm.slane %v460_v44, %v517_v50 }
 0x266   :  { %v454_v36 = vpop.permute.xlu1 %453 }
 0x267   :  { %v510_v47 = vperm.slane %v454_v36, %v509_v40 }
 0x269   :  { %v512_v53 = vsel %vm511_vm10, %v510_v47, %v508_v52 }
 0x26e   :  { %v457_v45 = vpop.permute.xlu0 %456 }
 0x26f   :  { %v514_v48 = vperm.slane %v457_v45, %v513_v42 }
 0x271   :  { %v516_v55 = vsel %vm515_vm11, %v514_v48, %v512_v53 }
 0x272   :  { %v520_v61 = vsel %vm519_vm12, %v518_v58, %v516_v55 }
 0x276   :  { %v469_v59 = vpop.permute.xlu2 %468 }
 0x277   :  { %v530_v63 = vperm.slane %v469_v59, %v529_v56 }
 0x27e   :  { %v463_v51 = vpop.permute.xlu1 %462 }
 0x27f   :  { %v522_v57 = vperm.slane %v463_v51, %v521_v49 }
 0x281   :  { %v524_v0 = vsel %vm523_vm13, %v522_v57, %v520_v61 }
 0x286   :  { %v466_v60 = vpop.permute.xlu0 %465 }
 0x287   :  { %v526_v62 = vperm.slane %v466_v60, %v525_v54 }
 0x289   :  { %v528_v1 = vsel %vm527_vm14, %v526_v62, %v524_v0 }
 0x28a   :  { %v532_v2 = vsel %vm531_vm15, %v530_v63, %v528_v1 }
 0x28b   :  { %534 = vst [vmem:[#allocation8] sm:$0x1] %v532_v2 }
 0x28c   :  { %545 = dma.vmem_to_hbm [thread:$0]  %s541_s2, 16, %s543_s5, [#allocation4]  }
 0x28d   :  { %735 = dma.done.wait [#allocation4], 16  }
 0x28e   :  { %736 = vsyncadd [#allocation4], 4294967280 }
 0x28f   :  { %550 = vsyncpa [#allocation3], 1 }
 0x290   :  { %551 = vsyncpa [#allocation6], 1 }
 0x291   :  { %552 = vsyncpa [#allocation4], 1 }

// kernel: tpu_custom_call.1
= control target key start
LH: loop header
LB: loop body
LE: loop exit
PB: predicated region body
PF: predicated region fallthrough
CT: control target
= control target key end

     0   :  { %8 = vsyncpa [#allocation3], 0  ;;  %s840_s0 = inlined_call_operand.hbm [shape: f32[8,32], index: 0, kind: input, shape index: {}]   ;;  %s841_s1 = inlined_call_operand.hbm [shape: bf16[168,128], index: 1, kind: input, shape index: {}]   ;;  %s842_s2 = inlined_call_operand.hbm [shape: f32[8,128], index: 2, kind: input, shape index: {}]   ;;  %s843_s3 = inlined_call_operand.hbm [shape: f32[1,128], index: 3, kind: output, shape index: {}]  }
   0x1   :  { %9 = vsyncpa [#allocation6], 0 }
   0x2   :  { %10 = vsyncpa [#allocation4], 0  ;;  %s28_s14 = sshll.u32 %s841_s1, 4  ;;  %s29_s14 = int_to_ptr.hbm [resolvable:$true] %s28_s14 }
   0x3   :  { %14 = vsyncadd [#allocation3], 1920  ;;  %s737_s15 = smov [#allocation5]   ;;  %s15_s19 = sshll.u32 %s840_s0, 4  ;;  %s16_s19 = int_to_ptr.hbm [resolvable:$true] %s15_s19 }
   0x4   :  { %s30_s16 = sshll.u32 %s737_s15, 4  ;;  %s738_s20 = smov 64   ;;  %s31_s16 = int_to_ptr.vmem [resolvable:$true] %s30_s16 }
   0x5   :  { %s739_s21 = smov 4   ;;  %s740_s22 = smov [#allocation2]  }
   0x6   :  { %36 = dma.hbm_to_vmem [thread:$0]  %s29_s14, 1344, %s31_s16, [#allocation6], %s738_s20, %s738_s20, %s739_s21  }
   0x7   :  { %s17_s23 = sshll.u32 %s740_s22, 4  ;;  %s741_s24 = smov 128   ;;  %s18_s23 = int_to_ptr.vmem [resolvable:$true] %s17_s23 }
   0x8   :  { %s742_s25 = smov 8   ;;  %s42_s27 = sshll.u32 %s842_s2, 4  ;;  %s43_s27 = int_to_ptr.hbm [resolvable:$true] %s42_s27 }
   0x9   :  { %23 = dma.hbm_to_vmem [thread:$0]  %s16_s19, 128, %s18_s23, [#allocation3], %s741_s24, %s741_s24, %s742_s25  }
   0xa   :  { %s743_s28 = smov [#allocation7]  }
   0xb   :  { %s44_s29 = sshll.u32 %s743_s28, 4  ;;  %s45_s29 = int_to_ptr.vmem [resolvable:$true] %s44_s29 }
   0xc   :  { %47 = dma.hbm_to_vmem [thread:$0]  %s43_s27, 128, %s45_s29, [#allocation6]  }
   0xd   :  { %731 = dma.done.wait [#allocation3], 2048  }
   0xe   :  { %732 = vsyncadd [#allocation3], 4294965248 }
   0xf   :  { %733 = dma.done.wait [#allocation6], 1472  }
  0x10   :  { %734 = vsyncadd [#allocation6], 4294965824  ;;  %v602_v0 = vld [vmem:[#allocation5 + $0x8] sm:$0xff]  ;;  %v601_v1 = vld [vmem:[#allocation5] sm:$0xff]  ;;  %vm122_vm0 = vcmask 261120   ;;  %vm475_vm1 = vcmask 130112  }
  0x11   :  { %153 = vmatpush.bf16.msra.mxu0 %v602_v0  ;;  %v61_v2 = vld [vmem:[#allocation2] sm:$0xff]  ;;  %v62_v3 = vld [vmem:[#allocation2 + $0x8] sm:$0xff]  ;;  %611 = vmatpush.bf16.msra.mxu3 %v602_v0  ;;  %v63_v5 = vld [vmem:[#allocation2 + $0x10] sm:$0xff]  ;;  %vm479_vm2 = vcmask 195712   ;;  %vm483_vm3 = vcmask 261312   ;;  %vm487_vm4 = vcmask 326912  }
  0x12   :  { %v77_v4 = vpack.c.bf16 %v62_v3, %v61_v2  ;;  %v64_v6 = vld [vmem:[#allocation2 + $0x18] sm:$0xff]  ;;  %v65_v8 = vld [vmem:[#allocation2 + $0x20] sm:$0xff]  ;;  %v66_v9 = vld [vmem:[#allocation2 + $0x28] sm:$0xff]  ;;  %vm491_vm5 = vcmask 392512   ;;  %vm495_vm6 = vcmask 458112   ;;  %vm499_vm7 = vcmask 523712  }
  0x13   :  { %v78_v7 = vpack.c.bf16 %v64_v6, %v63_v5  ;;  %v79_v10 = vpack.c.bf16 %v66_v9, %v65_v8  ;;  %v71_v11 = vld [vmem:[#allocation2 + $0x50] sm:$0xff]  ;;  %v72_v12 = vld [vmem:[#allocation2 + $0x58] sm:$0xff]  ;;  %v610_v14 = vld [vmem:[#allocation5 + $0x48] sm:$0xff]  ;;  %v744_v9 = vmov 0   ;;  %vm503_vm8 = vcmask 589312   ;;  %s745_s0 = smov [#allocation8]  }
  0x14   :  { %v82_v13 = vpack.c.bf16 %v72_v12, %v71_v11  ;;  %269 = vmatpush.bf16.msra.mxu1 %v610_v14  ;;  %v609_v15 = vld [vmem:[#allocation5 + $0x40] sm:$0xff]  ;;  %613 = vmatpush.bf16.msra.mxu2 %v610_v14  ;;  %v608_v16 = vld [vmem:[#allocation5 + $0x38] sm:$0xff]  ;;  %v67_v17 = vld [vmem:[#allocation2 + $0x30] sm:$0xff]  ;;  %vm507_vm9 = vcmask 654912   ;;  %vm511_vm10 = vcmask 720512   ;;  %vm515_vm11 = vcmask 786112  }
  0x15   :  { %154 = vmatpush.bf16.msra.mxu0 %v601_v1  ;;  %612 = vmatpush.bf16.msra.mxu3 %v601_v1  ;;  %v68_v18 = vld [vmem:[#allocation2 + $0x38] sm:$0xff]  ;;  %v73_v19 = vld [vmem:[#allocation2 + $0x60] sm:$0xff]  ;;  %v74_v20 = vld [vmem:[#allocation2 + $0x68] sm:$0xff]  ;;  %vm519_vm12 = vcmask 851712   ;;  %vm523_vm13 = vcmask 917312   ;;  %vm527_vm14 = vcmask 982912  }
  0x16   :  { %v80_v21 = vpack.c.bf16 %v68_v18, %v67_v17  ;;  %v607_v22 = vld [vmem:[#allocation5 + $0x30] sm:$0xff]  ;;  %v83_v23 = vpack.c.bf16 %v74_v20, %v73_v19  ;;  %v69_v24 = vld [vmem:[#allocation2 + $0x40] sm:$0xff]  ;;  %v70_v25 = vld [vmem:[#allocation2 + $0x48] sm:$0xff]  ;;  %630 = vset.pattern.permute.xlu1 %v744_v9  ;;  %631 = vset.pattern.permute.xlu2 %v744_v9  ;;  %s540_s2 = sshll.u32 %s745_s0, 4  ;;  %s542_s5 = sshll.u32 %s843_s3, 4  ;;  %vm531_vm15 = vcmask 1048512   ;;  %s541_s2 = int_to_ptr.vmem [resolvable:$true] %s540_s2  ;;  %s543_s5 = int_to_ptr.hbm [resolvable:$true] %s542_s5 }
  0x17   :  { %v75_v26 = vld [vmem:[#allocation2 + $0x70] sm:$0xff]  ;;  %v76_v27 = vld [vmem:[#allocation2 + $0x78] sm:$0xff]  ;;  %v81_v28 = vpack.c.bf16 %v70_v25, %v69_v24  ;;  %v606_v30 = vld [vmem:[#allocation5 + $0x28] sm:$0xff]  ;;  %632 = vset.pattern.permute.xlu0 %v744_v9 }
  0x18   :  { %561 = vmatmul.msk.bf16.vlgmr.msra.gmra.mxu0 %vm122_vm0, %v77_v4  ;;  %566 = vmatmul.msk.bf16.vlgmr.msra.gmra.mxu3 %vm122_vm0, %v82_v13  ;;  %v84_v29 = vpack.c.bf16 %v76_v27, %v75_v26  ;;  %v605_v31 = vld [vmem:[#allocation5 + $0x20] sm:$0xff]  ;;  %v604_v32 = vld [vmem:[#allocation5 + $0x18] sm:$0xff]  ;;  %v603_v33 = vld [vmem:[#allocation5 + $0x10] sm:$0xff] }
  0x19   :  { %270 = vmatpush.bf16.msra.mxu1 %v609_v15  ;;  %614 = vmatpush.bf16.msra.mxu2 %v609_v15  ;;  %v783_v35 = vld [vmem:[#allocation7] ss:$0 sm:$0xff]  ;;  %v108_v8 = vld [vmem:[#allocation7 + $0x2] sm:$0x1] }
  0x1a   :  { %386 = vperm.xlu1 %630, %v108_v8  }
  0x1d   :  { %271 = vmatpush.bf16.msra.mxu1 %v608_v16  ;;  %615 = vmatpush.bf16.msra.mxu2 %v608_v16 }
  0x21   :  { %272 = vmatpush.bf16.msra.mxu1 %v607_v22  ;;  %616 = vmatpush.bf16.msra.mxu2 %v607_v22 }
  0x25   :  { %273 = vmatpush.bf16.msra.mxu1 %v606_v30  ;;  %617 = vmatpush.bf16.msra.mxu2 %v606_v30  ;;  %v801_v30 = vld [vmem:[#allocation7 + $0x1] ss:$0 sm:$0xff] }
  0x28   :  { %562 = vmatmul.msk.bf16.gmra.mxu0 %vm122_vm0, %v78_v7  ;;  %567 = vmatmul.msk.bf16.gmra.mxu3 %vm122_vm0, %v83_v23 }
  0x29   :  { %274 = vmatpush.bf16.msra.mxu1 %v605_v31  ;;  %618 = vmatpush.bf16.msra.mxu2 %v605_v31 }
  0x2d   :  { %275 = vmatpush.bf16.msra.mxu1 %v604_v32  ;;  %619 = vmatpush.bf16.msra.mxu2 %v604_v32 }
  0x31   :  { %276 = vmatpush.bf16.msra.mxu1 %v603_v33  ;;  %620 = vmatpush.bf16.msra.mxu2 %v603_v33 }
  0x38   :  { %563 = vmatmul.msk.bf16.gmra.mxu0 %vm122_vm0, %v79_v10  ;;  %568 = vmatmul.msk.bf16.gmra.mxu3 %vm122_vm0, %v84_v29  ;;  %v105_v29 = vld [vmem:[#allocation5 + $0x50] sm:$0x1] }
  0x39   :  { %v334_v31 = vunpack.c.l.bf16 %v105_v29 }
  0x48   :  { %564 = vmatmul.msk.bf16.gmra.mxu0 %vm122_vm0, %v80_v21 }
  0x58   :  { %565 = vmatmul.msk.bf16.gmra.mxu0 %vm122_vm0, %v81_v28 }
  0x95   :  { %v156_v34 = vpop.f32.mrf.mxu0 }
  0x96   :  { %v157_v36 = vadd.f32 %v783_v35, %v156_v34  ;;  %v804_v34 = vperm.slane %v334_v31, 0 }
  0x98   :  { %v196_v39 = vmax.f32 %v157_v36, 0.0 }
  0x9b   :  { %v181_v0 = vpop.f32.mrf.mxu3 }
  0x9c   :  { %v182_v11 = vadd.f32 %v783_v35, %v181_v0 }
  0x9d   :  { %v158_v37 = vpop.f32.mrf.mxu0 }
  0x9e   :  { %v159_v38 = vadd.f32 %v783_v35, %v158_v37  ;;  %v206_v13 = vmax.f32 %v182_v11, 0.0 }
  0xa0   :  { %v197_v40 = vmax.f32 %v159_v38, 0.0 }
  0xa2   :  { %v212_v41 = vpack.c.bf16 %v197_v40, %v196_v39 }
  0xa3   :  { %v183_v4 = vpop.f32.mrf.mxu3 }
  0xa4   :  { %277 = vmatmul.bf16.vlgmr.msra.gmra.mxu1 %v212_v41  ;;  %v184_v12 = vadd.f32 %v783_v35, %v183_v4 }
  0xa5   :  { %v161_v42 = vpop.f32.mrf.mxu0 }
  0xa6   :  { %v162_v43 = vadd.f32 %v783_v35, %v161_v42  ;;  %v207_v14 = vmax.f32 %v184_v12, 0.0 }
  0xa8   :  { %v198_v46 = vmax.f32 %v162_v43, 0.0  ;;  %v217_v15 = vpack.c.bf16 %v207_v14, %v206_v13 }
  0xab   :  { %v186_v10 = vpop.f32.mrf.mxu3 }
  0xac   :  { %v187_v17 = vadd.f32 %v783_v35, %v186_v10 }
  0xad   :  { %v163_v44 = vpop.f32.mrf.mxu0 }
  0xae   :  { %v164_v45 = vadd.f32 %v783_v35, %v163_v44  ;;  %v208_v20 = vmax.f32 %v187_v17, 0.0 }
  0xb0   :  { %v199_v47 = vmax.f32 %v164_v45, 0.0 }
  0xb2   :  { %v213_v48 = vpack.c.bf16 %v199_v47, %v198_v46 }
  0xb3   :  { %v188_v16 = vpop.f32.mrf.mxu3 }
  0xb4   :  { %282 = vmatmul.bf16.gmra.mxu1 %v213_v48  ;;  %v189_v18 = vadd.f32 %v783_v35, %v188_v16 }
  0xb5   :  { %v166_v49 = vpop.f32.mrf.mxu0 }
  0xb6   :  { %v167_v50 = vadd.f32 %v783_v35, %v166_v49  ;;  %v209_v21 = vmax.f32 %v189_v18, 0.0 }
  0xb8   :  { %v200_v53 = vmax.f32 %v167_v50, 0.0  ;;  %v218_v22 = vpack.c.bf16 %v209_v21, %v208_v20 }
  0xbb   :  { %v191_v19 = vpop.f32.mrf.mxu3 }
  0xbc   :  { %v192_v24 = vadd.f32 %v783_v35, %v191_v19 }
  0xbd   :  { %v168_v51 = vpop.f32.mrf.mxu0 }
  0xbe   :  { %v169_v52 = vadd.f32 %v783_v35, %v168_v51  ;;  %v210_v26 = vmax.f32 %v192_v24, 0.0 }
  0xc0   :  { %v201_v54 = vmax.f32 %v169_v52, 0.0 }
  0xc2   :  { %v214_v55 = vpack.c.bf16 %v201_v54, %v200_v53 }
  0xc3   :  { %v193_v23 = vpop.f32.mrf.mxu3 }
  0xc4   :  { %287 = vmatmul.bf16.gmra.mxu1 %v214_v55  ;;  %v194_v25 = vadd.f32 %v783_v35, %v193_v23 }
  0xc5   :  { %v171_v56 = vpop.f32.mrf.mxu0 }
  0xc6   :  { %v172_v57 = vadd.f32 %v783_v35, %v171_v56  ;;  %v211_v27 = vmax.f32 %v194_v25, 0.0 }
  0xc8   :  { %v202_v60 = vmax.f32 %v172_v57, 0.0  ;;  %v219_v28 = vpack.c.bf16 %v211_v27, %v210_v26 }
  0xcd   :  { %v173_v58 = vpop.f32.mrf.mxu0 }
  0xce   :  { %v174_v59 = vadd.f32 %v783_v35, %v173_v58 }
  0xd0   :  { %v203_v61 = vmax.f32 %v174_v59, 0.0 }
  0xd2   :  { %v215_v62 = vpack.c.bf16 %v203_v61, %v202_v60 }
  0xd4   :  { %292 = vmatmul.bf16.gmra.mxu1 %v215_v62 }
  0xd5   :  { %v176_v63 = vpop.f32.mrf.mxu0 }
  0xd6   :  { %v177_v1 = vadd.f32 %v783_v35, %v176_v63 }
  0xd8   :  { %v204_v5 = vmax.f32 %v177_v1, 0.0 }
  0xdd   :  { %v178_v2 = vpop.f32.mrf.mxu0 }
  0xde   :  { %v179_v3 = vadd.f32 %v783_v35, %v178_v2 }
  0xe0   :  { %v205_v6 = vmax.f32 %v179_v3, 0.0 }
  0xe2   :  { %v216_v7 = vpack.c.bf16 %v205_v6, %v204_v5 }
  0xe4   :  { %297 = vmatmul.bf16.vlgmr.msra.gmra.mxu2 %v216_v7 }
  0xf4   :  { %302 = vmatmul.bf16.gmra.mxu2 %v217_v15 }
 0x104   :  { %307 = vmatmul.bf16.gmra.mxu2 %v218_v22 }
 0x114   :  { %312 = vmatmul.bf16.gmra.mxu2 %v219_v28 }
 0x121   :  { %v278_v32 = vpop.f32.mrf.mxu1 }
 0x122   :  { %v279_v33 = vadd.f32 %v801_v30, %v278_v32 }
 0x124   :  { %v318_v36 = vmax.f32 %v279_v33, 0.0  ;;  %v387_v33 = vpop.permute.xlu1 %386 }
 0x126   :  { %v336_v37 = vmul.f32 %v804_v34, %v318_v36 }
 0x128   :  { %352 = vadd.xlane.f32.xlu0 %v336_v37 }
 0x129   :  { %v280_v38 = vpop.f32.mrf.mxu1 }
 0x12a   :  { %v281_v35 = vadd.f32 %v801_v30, %v280_v38 }
 0x12c   :  { %v319_v39 = vmax.f32 %v281_v35, 0.0  ;;  %v388_v35 = vperm.slane %v387_v33, 0 }
 0x12e   :  { %v337_v40 = vmul.f32 %v804_v34, %v319_v39 }
 0x130   :  { %354 = vadd.xlane.f32.xlu0 %v337_v40 }
 0x131   :  { %v283_v41 = vpop.f32.mrf.mxu1 }
 0x132   :  { %v284_v42 = vadd.f32 %v801_v30, %v283_v41 }
 0x134   :  { %v320_v43 = vmax.f32 %v284_v42, 0.0 }
 0x136   :  { %v338_v44 = vmul.f32 %v804_v34, %v320_v43 }
 0x138   :  { %356 = vadd.xlane.f32.xlu1 %v338_v44 }
 0x139   :  { %v285_v45 = vpop.f32.mrf.mxu1 }
 0x13a   :  { %v286_v46 = vadd.f32 %v801_v30, %v285_v45 }
 0x13c   :  { %v321_v47 = vmax.f32 %v286_v46, 0.0 }
 0x13e   :  { %v339_v48 = vmul.f32 %v804_v34, %v321_v47 }
 0x140   :  { %358 = vadd.xlane.f32.xlu1 %v339_v48 }
 0x141   :  { %v288_v49 = vpop.f32.mrf.mxu1 }
 0x142   :  { %v289_v50 = vadd.f32 %v801_v30, %v288_v49 }
 0x144   :  { %v322_v51 = vmax.f32 %v289_v50, 0.0 }
 0x146   :  { %v340_v52 = vmul.f32 %v804_v34, %v322_v51 }
 0x148   :  { %360 = vadd.xlane.f32.xlu2 %v340_v52 }
 0x149   :  { %v290_v53 = vpop.f32.mrf.mxu1 }
 0x14a   :  { %v291_v54 = vadd.f32 %v801_v30, %v290_v53 }
 0x14c   :  { %v323_v55 = vmax.f32 %v291_v54, 0.0 }
 0x14e   :  { %v341_v56 = vmul.f32 %v804_v34, %v323_v55 }
 0x150   :  { %362 = vadd.xlane.f32.xlu2 %v341_v56 }
 0x151   :  { %v293_v57 = vpop.f32.mrf.mxu1 }
 0x152   :  { %v294_v58 = vadd.f32 %v801_v30, %v293_v57 }
 0x154   :  { %v324_v59 = vmax.f32 %v294_v58, 0.0 }
 0x156   :  { %v342_v60 = vmul.f32 %v804_v34, %v324_v59 }
 0x158   :  { %364 = vadd.xlane.f32.xlu0 %v342_v60 }
 0x159   :  { %v295_v61 = vpop.f32.mrf.mxu1 }
 0x15a   :  { %v296_v62 = vadd.f32 %v801_v30, %v295_v61 }
 0x15c   :  { %v325_v63 = vmax.f32 %v296_v62, 0.0 }
 0x15e   :  { %v343_v0 = vmul.f32 %v804_v34, %v325_v63 }
 0x160   :  { %366 = vadd.xlane.f32.xlu1 %v343_v0 }
 0x167   :  { %v298_v1 = vpop.f32.mrf.mxu2 }
 0x168   :  { %v299_v2 = vadd.f32 %v801_v30, %v298_v1 }
 0x16a   :  { %v326_v3 = vmax.f32 %v299_v2, 0.0 }
 0x16c   :  { %v344_v4 = vmul.f32 %v804_v34, %v326_v3 }
 0x16e   :  { %368 = vadd.xlane.f32.xlu2 %v344_v4 }
 0x16f   :  { %v300_v5 = vpop.f32.mrf.mxu2 }
 0x170   :  { %v301_v6 = vadd.f32 %v801_v30, %v300_v5 }
 0x172   :  { %v327_v7 = vmax.f32 %v301_v6, 0.0  ;;  %v470_v6 = vlaneseq }
 0x174   :  { %v345_v8 = vmul.f32 %v804_v34, %v327_v7 }
 0x176   :  { %370 = vadd.xlane.f32.xlu0 %v345_v8  ;;  %v471_v8 = vand.u32 127, %v470_v6 }
 0x177   :  { %v303_v9 = vpop.f32.mrf.mxu2 }
 0x178   :  { %v304_v10 = vadd.f32 %v801_v30, %v303_v9  ;;  %v473_v9 = vadd.s32 4294967288, %v471_v8 }
 0x17a   :  { %v328_v11 = vmax.f32 %v304_v10, 0.0 }
 0x17c   :  { %v346_v12 = vmul.f32 %v804_v34, %v328_v11 }
 0x17e   :  { %372 = vadd.xlane.f32.xlu1 %v346_v12 }
 0x17f   :  { %v305_v13 = vpop.f32.mrf.mxu2 }
 0x180   :  { %v306_v14 = vadd.f32 %v801_v30, %v305_v13  ;;  %v477_v13 = vadd.s32 4294967280, %v471_v8 }
 0x182   :  { %v329_v15 = vmax.f32 %v306_v14, 0.0 }
 0x184   :  { %v347_v16 = vmul.f32 %v804_v34, %v329_v15 }
 0x186   :  { %374 = vadd.xlane.f32.xlu2 %v347_v16  ;;  %v481_v16 = vadd.s32 4294967272, %v471_v8 }
 0x187   :  { %v308_v17 = vpop.f32.mrf.mxu2 }
 0x188   :  { %v309_v18 = vadd.f32 %v801_v30, %v308_v17 }
 0x18a   :  { %v330_v19 = vmax.f32 %v309_v18, 0.0 }
 0x18c   :  { %v348_v20 = vmul.f32 %v804_v34, %v330_v19 }
 0x18e   :  { %376 = vadd.xlane.f32.xlu0 %v348_v20  ;;  %v489_v20 = vadd.s32 4294967256, %v471_v8 }
 0x18f   :  { %v310_v21 = vpop.f32.mrf.mxu2 }
 0x190   :  { %v311_v22 = vadd.f32 %v801_v30, %v310_v21  ;;  %v485_v21 = vadd.s32 4294967264, %v471_v8 }
 0x192   :  { %v331_v23 = vmax.f32 %v311_v22, 0.0 }
 0x194   :  { %v349_v24 = vmul.f32 %v804_v34, %v331_v23 }
 0x196   :  { %378 = vadd.xlane.f32.xlu1 %v349_v24 }
 0x197   :  { %v313_v25 = vpop.f32.mrf.mxu2 }
 0x198   :  { %v314_v26 = vadd.f32 %v801_v30, %v313_v25 }
 0x19a   :  { %v332_v27 = vmax.f32 %v314_v26, 0.0 }
 0x19b   :  { %v353_v37 = vpop.xlane.xlu0 %352 }
 0x19c   :  { %v350_v28 = vmul.f32 %v804_v34, %v332_v27  ;;  %v390_v40 = vadd.f32 %v388_v35, %v353_v37 }
 0x19e   :  { %380 = vadd.xlane.f32.xlu2 %v350_v28  ;;  %v497_v28 = vadd.s32 4294967240, %v471_v8 }
 0x19f   :  { %v315_v29 = vpop.f32.mrf.mxu2 }
 0x1a0   :  { %v316_v31 = vadd.f32 %v801_v30, %v315_v29 }
 0x1a2   :  { %v333_v32 = vmax.f32 %v316_v31, 0.0  ;;  %v493_v31 = vadd.s32 4294967248, %v471_v8 }
 0x1a3   :  { %v355_v42 = vpop.xlane.xlu0 %354 }
 0x1a4   :  { %v351_v36 = vmul.f32 %v804_v34, %v333_v32  ;;  %v391_v43 = vadd.f32 %v388_v35, %v355_v42  ;;  %v501_v32 = vadd.s32 4294967232, %v471_v8  ;;  %v513_v42 = vadd.s32 4294967208, %v471_v8 }
 0x1a6   :  { %382 = vadd.xlane.f32.xlu0 %v351_v36 }
 0x1ab   :  { %v357_v38 = vpop.xlane.xlu1 %356 }
 0x1ac   :  { %v392_v45 = vadd.f32 %v388_v35, %v357_v38 }
 0x1b3   :  { %v359_v39 = vpop.xlane.xlu1 %358 }
 0x1b4   :  { %v393_v41 = vadd.f32 %v388_v35, %v359_v39 }
 0x1b6   :  { %432 = vperm.xlu1 %630, %v393_v41   ;;  %423 = vperm.xlu2 %631, %v390_v40   ;;  %v509_v40 = vadd.s32 4294967216, %v471_v8  ;;  %v505_v41 = vadd.s32 4294967224, %v471_v8 }
 0x1ba   :  { %426 = vperm.xlu0 %632, %v391_v43  }
 0x1bb   :  { %v361_v44 = vpop.xlane.xlu2 %360 }
 0x1bc   :  { %v394_v46 = vadd.f32 %v388_v35, %v361_v44 }
 0x1be   :  { %429 = vperm.xlu2 %631, %v392_v45  }
 0x1c3   :  { %v363_v30 = vpop.xlane.xlu2 %362 }
 0x1c4   :  { %v395_v47 = vadd.f32 %v388_v35, %v363_v30 }
 0x1c6   :  { %438 = vperm.xlu1 %630, %v395_v47   ;;  %435 = vperm.xlu2 %631, %v394_v46  }
 0x1cb   :  { %v365_v34 = vpop.xlane.xlu0 %364 }
 0x1cc   :  { %v396_v48 = vadd.f32 %v388_v35, %v365_v34 }
 0x1ce   :  { %441 = vperm.xlu2 %631, %v396_v48  }
 0x1d3   :  { %v367_v49 = vpop.xlane.xlu1 %366 }
 0x1d4   :  { %v397_v50 = vadd.f32 %v388_v35, %v367_v49  ;;  %v521_v49 = vadd.s32 4294967192, %v471_v8 }
 0x1d6   :  { %444 = vperm.xlu1 %630, %v397_v50   ;;  %v517_v50 = vadd.s32 4294967200, %v471_v8 }
 0x1e1   :  { %v369_v51 = vpop.xlane.xlu2 %368 }
 0x1e2   :  { %v398_v52 = vadd.f32 %v388_v35, %v369_v51 }
 0x1e4   :  { %447 = vperm.xlu0 %632, %v398_v52  }
 0x1e9   :  { %v371_v53 = vpop.xlane.xlu0 %370 }
 0x1ea   :  { %v399_v54 = vadd.f32 %v388_v35, %v371_v53 }
 0x1ec   :  { %450 = vperm.xlu2 %631, %v399_v54   ;;  %v525_v54 = vadd.s32 4294967184, %v471_v8 }
 0x1f1   :  { %v373_v55 = vpop.xlane.xlu1 %372 }
 0x1f2   :  { %v400_v56 = vadd.f32 %v388_v35, %v373_v55 }
 0x1f4   :  { %453 = vperm.xlu1 %630, %v400_v56   ;;  %v529_v56 = vadd.s32 4294967176, %v471_v8 }
 0x1f9   :  { %v375_v57 = vpop.xlane.xlu2 %374 }
 0x1fa   :  { %v401_v58 = vadd.f32 %v388_v35, %v375_v57 }
 0x1fc   :  { %456 = vperm.xlu0 %632, %v401_v58  }
 0x201   :  { %v377_v59 = vpop.xlane.xlu0 %376 }
 0x202   :  { %v402_v60 = vadd.f32 %v388_v35, %v377_v59 }
 0x204   :  { %459 = vperm.xlu2 %631, %v402_v60  }
 0x209   :  { %v379_v61 = vpop.xlane.xlu1 %378 }
 0x20a   :  { %v403_v62 = vadd.f32 %v388_v35, %v379_v61 }
 0x20c   :  { %462 = vperm.xlu1 %630, %v403_v62  }
 0x211   :  { %v381_v63 = vpop.xlane.xlu2 %380 }
 0x212   :  { %v404_v0 = vadd.f32 %v388_v35, %v381_v63 }
 0x214   :  { %465 = vperm.xlu0 %632, %v404_v0  }
 0x219   :  { %v383_v1 = vpop.xlane.xlu0 %382  ;;  %v424_v3 = vpop.permute.xlu2 %423 }
 0x21a   :  { %v405_v2 = vadd.f32 %v388_v35, %v383_v1  ;;  %v472_v15 = vperm.slane %v424_v3, %v471_v8 }
 0x21c   :  { %468 = vperm.xlu2 %631, %v405_v2  }
 0x221   :  { %v430_v4 = vpop.permute.xlu2 %429 }
 0x222   :  { %v478_v18 = vperm.slane %v430_v4, %v477_v13 }
 0x228   :  { %v433_v5 = vpop.permute.xlu1 %432 }
 0x229   :  { %v436_v7 = vpop.permute.xlu2 %435  ;;  %v482_v23 = vperm.slane %v433_v5, %v481_v16 }
 0x22a   :  { %v486_v29 = vperm.slane %v436_v7, %v485_v21 }
 0x22c   :  { %v427_v10 = vpop.permute.xlu0 %426 }
 0x22d   :  { %v474_v12 = vperm.slane %v427_v10, %v473_v9 }
 0x22f   :  { %v476_v17 = vsel %vm475_vm1, %v474_v12, %v472_v15 }
 0x230   :  { %v480_v22 = vsel %vm479_vm2, %v478_v18, %v476_v17 }
 0x231   :  { %v442_v14 = vpop.permute.xlu2 %441  ;;  %v484_v26 = vsel %vm483_vm3, %v482_v23, %v480_v22 }
 0x232   :  { %v488_v33 = vsel %vm487_vm4, %v486_v29, %v484_v26  ;;  %v494_v35 = vperm.slane %v442_v14, %v493_v31 }
 0x238   :  { %v439_v11 = vpop.permute.xlu1 %438 }
 0x239   :  { %v490_v27 = vperm.slane %v439_v11, %v489_v20 }
 0x23b   :  { %v492_v37 = vsel %vm491_vm5, %v490_v27, %v488_v33 }
 0x23c   :  { %v496_v43 = vsel %vm495_vm6, %v494_v35, %v492_v37 }
 0x246   :  { %v451_v24 = vpop.permute.xlu2 %450 }
 0x247   :  { %v506_v34 = vperm.slane %v451_v24, %v505_v41 }
 0x248   :  { %v445_v19 = vpop.permute.xlu1 %444 }
 0x249   :  { %v498_v38 = vperm.slane %v445_v19, %v497_v28 }
 0x24b   :  { %v500_v30 = vsel %vm499_vm7, %v498_v38, %v496_v43 }
 0x256   :  { %v448_v25 = vpop.permute.xlu0 %447 }
 0x257   :  { %v502_v39 = vperm.slane %v448_v25, %v501_v32 }
 0x259   :  { %v504_v46 = vsel %vm503_vm8, %v502_v39, %v500_v30 }
 0x25a   :  { %v508_v52 = vsel %vm507_vm9, %v506_v34, %v504_v46 }
 0x25e   :  { %v460_v44 = vpop.permute.xlu2 %459 }
 0x25f   :  { %v518_v58 = vperm.slane %v460_v44, %v517_v50 }
 0x266   :  { %v454_v36 = vpop.permute.xlu1 %453 }
 0x267   :  { %v510_v47 = vperm.slane %v454_v36, %v509_v40 }
 0x269   :  { %v512_v53 = vsel %vm511_vm10, %v510_v47, %v508_v52 }
 0x26e   :  { %v457_v45 = vpop.permute.xlu0 %456 }
 0x26f   :  { %v514_v48 = vperm.slane %v457_v45, %v513_v42 }
 0x271   :  { %v516_v55 = vsel %vm515_vm11, %v514_v48, %v512_v53 }
 0x272   :  { %v520_v61 = vsel %vm519_vm12, %v518_v58, %v516_v55 }
 0x276   :  { %v469_v59 = vpop.permute.xlu2 %468 }
 0x277   :  { %v530_v63 = vperm.slane %v469_v59, %v529_v56 }
 0x27e   :  { %v463_v51 = vpop.permute.xlu1 %462 }
 0x27f   :  { %v522_v57 = vperm.slane %v463_v51, %v521_v49 }
 0x281   :  { %v524_v0 = vsel %vm523_vm13, %v522_v57, %v520_v61 }
 0x286   :  { %v466_v60 = vpop.permute.xlu0 %465 }
 0x287   :  { %v526_v62 = vperm.slane %v466_v60, %v525_v54 }
 0x289   :  { %v528_v1 = vsel %vm527_vm14, %v526_v62, %v524_v0 }
 0x28a   :  { %v532_v2 = vsel %vm531_vm15, %v530_v63, %v528_v1 }
 0x28b   :  { %534 = vst [vmem:[#allocation8] sm:$0x1] %v532_v2 }
 0x28c   :  { %545 = dma.vmem_to_hbm [thread:$0]  %s541_s2, 16, %s543_s5, [#allocation4]  }
 0x28d   :  { %735 = dma.done.wait [#allocation4], 16  }
 0x28e   :  { %736 = vsyncadd [#allocation4], 4294967280 }
 0x28f   :  { %550 = vsyncpa [#allocation3], 1 }
 0x290   :  { %551 = vsyncpa [#allocation6], 1 }
 0x291   :  { %552 = vsyncpa [#allocation4], 1 }

</bundles_post_ra>
